<compile_context>
chip_gen: v7x
topology: tpu7x:2x2x1
jax: 0.10.0
libtpu: 0.0.40
codegen_flags: <defaults>
</compile_context>

<pallas_src>
import functools

import jax
import jax.numpy as jnp
from jax.experimental import pallas as pl
from jax.experimental.pallas import tpu as pltpu

_MiB = 1 << 20


def _round_up(x, m):
    return ((x + m - 1) // m) * m


def _vmem_limit_bytes():
    """Per-generation scoped-VMEM budget (explicit: defaults are only 16/32 MiB)."""
    try:
        cap = int(pltpu.get_tpu_info().vmem_capacity_bytes)
    except Exception:
        cap = 64 * _MiB                      # conservative (v7x-sized) fallback
    if cap >= 128 * _MiB:                    # v5e / v6e: 128 MiB physical VMEM
        return 48 * _MiB
    if cap >= 64 * _MiB:                     # v7x: 64 MiB physical per TensorCore
        return 40 * _MiB
    return max(16 * _MiB, cap // 2)


def _bytes_per_element(itemsize):
    # Per-element VMEM working set of one streamed tile:
    #   2 inputs x 2 pipeline buffers + ~6 f32 temporaries in the fused KL pass.
    return 4 * itemsize + 6 * 4


def _sum_all(x):
    """Full reduction to (1, 1): lane reduce then sublane reduce."""
    return jnp.sum(jnp.sum(x, axis=1, keepdims=True), axis=0, keepdims=True)


def _fused_rowwise_kl(zs, zt):
    """Per-row sum_c softmax(zt)*(log_softmax(zt) - log_softmax(zs)), fused as
         sum(e_lt*(lt-ls))/Zt - log Zt + log Zs
    so no full-width log_softmax / p_t tensors are materialized."""
    ls = zs - jnp.max(zs, axis=1, keepdims=True)
    lt = zt - jnp.max(zt, axis=1, keepdims=True)
    e_lt = jnp.exp(lt)
    z_t = jnp.sum(e_lt, axis=1, keepdims=True)
    z_s = jnp.sum(jnp.exp(ls), axis=1, keepdims=True)
    num = jnp.sum(e_lt * (lt - ls), axis=1, keepdims=True)
    # Exact divide (the fusion already folds sum(p_t)=1 analytically).
    return num / z_t + jnp.log(z_s / z_t)                      # (rows, 1)


# ---------------------------------------------------------------------------
# Resident fast path: whole [B, C] pair lives in VMEM; one fused kernel.
# ---------------------------------------------------------------------------
def _resident_kernel(ys_ref, yt_ref, out_ref, *, temp, batch, n):
    ys = ys_ref[...].astype(jnp.float32)
    yt = yt_ref[...].astype(jnp.float32)
    inv_n = 1.0 / n
    inv_nm1 = 1.0 / float(max(n - 1, 1))

    def standardize(x):
        mean = _sum_all(x) * inv_n                 # (1,1)
        d = x - mean
        var = _sum_all(d * d) * inv_nm1            # exact two-pass variance (torch.std)
        return d * (1.0 / (temp * (1e-07 + jnp.sqrt(var))))

    row_kl = _fused_rowwise_kl(standardize(ys), standardize(yt))      # (B, 1)
    out_ref[...] = jnp.sum(row_kl, axis=0, keepdims=True) * (temp * temp / batch)


# ---------------------------------------------------------------------------
# Streaming path, pass 1: per-tile shifted sum / sum-of-squares lane partials.
# ---------------------------------------------------------------------------
def _stats_partial_kernel(shift_ref, ys_ref, yt_ref, out_ref):
    ys = ys_ref[...].astype(jnp.float32) - shift_ref[0]
    yt = yt_ref[...].astype(jnp.float32) - shift_ref[1]
    out_ref[0:1, :] = jnp.sum(ys, axis=0, keepdims=True)
    out_ref[1:2, :] = jnp.sum(ys * ys, axis=0, keepdims=True)
    out_ref[2:3, :] = jnp.sum(yt, axis=0, keepdims=True)
    out_ref[3:4, :] = jnp.sum(yt * yt, axis=0, keepdims=True)


# ---------------------------------------------------------------------------
# Streaming path, pass 2: per-tile fused softmax/KL partial sums.
# ---------------------------------------------------------------------------
def _kl_partial_kernel(scale_ref, ys_ref, yt_ref, out_ref):
    zs = ys_ref[...].astype(jnp.float32) * scale_ref[0]
    zt = yt_ref[...].astype(jnp.float32) * scale_ref[1]
    row_kl = _fused_rowwise_kl(zs, zt)                         # (tb, 1)
    out_ref[...] = jnp.sum(row_kl, axis=0, keepdims=True)      # (1, 1)


def distill_kl_logit_stand(y_s, y_t, temp, *, block_rows=None):
    """Pallas TPU implementation of DistillKL_logit_stand.forward(y_s, y_t)."""
    assert y_s.shape == y_t.shape and y_s.ndim == 2
    B, C = y_s.shape
    itemsize = jnp.dtype(y_s.dtype).itemsize
    n = B * C
    temp = float(temp)

    vmem_limit = _vmem_limit_bytes()
    budget = int(0.85 * vmem_limit)

    # ---------------- VMEM-resident single-pass path ----------------
    if block_rows is None and n * _bytes_per_element(itemsize) <= budget:
        kernel = functools.partial(_resident_kernel, temp=temp, batch=B, n=n)
        out = pl.pallas_call(
            kernel,
            out_shape=jax.ShapeDtypeStruct((1, 1), jnp.float32),
            grid=(1,),
            in_specs=[pl.BlockSpec((B, C), lambda i: (0, 0)),
                      pl.BlockSpec((B, C), lambda i: (0, 0))],
            out_specs=pl.BlockSpec((1, 1), lambda i: (0, 0)),
            compiler_params=pltpu.CompilerParams(
                dimension_semantics=("arbitrary",),
                vmem_limit_bytes=vmem_limit),
            cost_estimate=pl.CostEstimate(
                flops=int(18 * n), transcendentals=int(2 * n),
                bytes_accessed=int(2 * n * itemsize + 4)),
        )(y_s, y_t)
        return out[0, 0]

    # ---------------- Streaming two-pass path (parallel tiles) ----------------
    row_align = 8 * max(1, 4 // itemsize)       # 8 f32 / 16 bf16 / 32 int8-fp8 sublanes
    if block_rows is None:
        tb = max(row_align,
                 (budget // max(1, C * _bytes_per_element(itemsize)))
                 // row_align * row_align)
        tb = min(tb, _round_up(B, row_align))
    else:
        tb = int(block_rows)
        assert tb % row_align == 0, (tb, row_align)
    bp = _round_up(B, tb)
    num_tiles = bp // tb

    # Shift = first element of each tensor (cancellation-robust one-pass stats).
    # Padded rows are filled with the shift, so they contribute exactly zero to
    # the shifted statistics and exactly zero KL (constant row -> uniform softmax
    # for both student and teacher).
    shift_s = y_s[0, 0]
    shift_t = y_t[0, 0]
    if bp > B:
        pad_s = jnp.broadcast_to(shift_s, (bp - B, C)).astype(y_s.dtype)
        pad_t = jnp.broadcast_to(shift_t, (bp - B, C)).astype(y_t.dtype)
        ys_p = jnp.concatenate([y_s, pad_s], axis=0)
        yt_p = jnp.concatenate([y_t, pad_t], axis=0)
    else:
        ys_p, yt_p = y_s, y_t
    shifts = jnp.stack([shift_s, shift_t]).astype(jnp.float32)      # (2,) -> SMEM

    cparams = pltpu.CompilerParams(dimension_semantics=("parallel",),
                                   vmem_limit_bytes=vmem_limit)
    smem_spec = pl.BlockSpec(memory_space=pltpu.MemorySpace.SMEM)
    in_tile = pl.BlockSpec((tb, C), lambda t: (t, 0))

    # Pass 1: per-tile vector partials (collapsed once in the wrapper).
    stats = pl.pallas_call(
        _stats_partial_kernel,
        out_shape=jax.ShapeDtypeStruct((num_tiles, 4, C), jnp.float32),
        grid=(num_tiles,),
        in_specs=[smem_spec, in_tile, in_tile],
        out_specs=pl.BlockSpec((None, 4, C), lambda t: (t, 0, 0)),
        compiler_params=cparams,
        cost_estimate=pl.CostEstimate(
            flops=int(8 * bp * C), transcendentals=0,
            bytes_accessed=int(2 * bp * C * itemsize + num_tiles * 4 * C * 4)),
    )(shifts, ys_p, yt_p)

    sums = jnp.sum(stats, axis=(0, 2))                              # (4,)
    inv_nm1 = 1.0 / float(max(n - 1, 1))

    def _inv_scale(s, sq):
        mean = s / n                                                # shifted mean
        var = jnp.maximum((sq - n * mean * mean) * inv_nm1, 0.0)    # shift-invariant
        return 1.0 / (temp * (1e-07 + jnp.sqrt(var)))

    scales = jnp.stack([_inv_scale(sums[0], sums[1]),
                        _inv_scale(sums[2], sums[3])]).astype(jnp.float32)

    # Pass 2: per-tile fused softmax/KL partials (scales hoisted to SMEM scalars).
    kl_parts = pl.pallas_call(
        _kl_partial_kernel,
        out_shape=jax.ShapeDtypeStruct((num_tiles, 1, 1), jnp.float32),
        grid=(num_tiles,),
        in_specs=[smem_spec, in_tile, in_tile],
        out_specs=pl.BlockSpec((None, 1, 1), lambda t: (t, 0, 0)),
        compiler_params=cparams,
        cost_estimate=pl.CostEstimate(
            flops=int(12 * bp * C), transcendentals=int(2 * bp * C),
            bytes_accessed=int(2 * bp * C * itemsize + num_tiles * 4)),
    )(scales, ys_p, yt_p)

    return jnp.sum(kl_parts) * (temp * temp / B)


def _reference(y_s, y_t, temp):
    """Pure-JAX reference mirroring the PyTorch forward."""
    def standardize(x):
        x = x.astype(jnp.float32)
        mean = jnp.mean(x)
        std = jnp.sqrt(jnp.sum((x - mean) ** 2) / (x.size - 1))
        return (x - mean) / (1e-07 + std)

    t = float(temp)
    s = standardize(y_s) / t
    tt = standardize(y_t) / t
    log_p_s = jax.nn.log_softmax(s, axis=1)
    log_p_t = jax.nn.log_softmax(tt, axis=1)
    p_t = jnp.exp(log_p_t)
    kl = jnp.sum(p_t * (log_p_t - log_p_s)) / y_s.shape[0]
    return kl * t * t


if __name__ == "__main__":
    key = jax.random.PRNGKey(0)
    temp = 4.0
    k1, k2, k3, k4, k5, k6 = jax.random.split(key, 6)

    # 1) VMEM-resident single-kernel path (small logits, one HBM read).
    y_s = jax.random.normal(k1, (8, 128), dtype=jnp.float32)
    y_t = jax.random.normal(k2, (8, 128), dtype=jnp.float32) * 1.5 + 0.3
    loss = jax.block_until_ready(distill_kl_logit_stand(y_s, y_t, temp))
    ref = _reference(y_s, y_t, temp)
    assert jnp.allclose(loss, ref, rtol=5e-3, atol=1e-5), (loss, ref)

    # 2) Streaming two-pass path (forced small tiles -> multi-tile parallel grid).
    y_s2 = jax.random.normal(k3, (32, 256), dtype=jnp.float32) * 2.0 - 0.5
    y_t2 = jax.random.normal(k4, (32, 256), dtype=jnp.float32) + 1.0
    loss2 = jax.block_until_ready(
        distill_kl_logit_stand(y_s2, y_t2, temp, block_rows=8))
    ref2 = _reference(y_s2, y_t2, temp)
    assert jnp.allclose(loss2, ref2, rtol=5e-3, atol=1e-5), (loss2, ref2)

    # 3) Streaming path with batch padding (B not a multiple of the row tile).
    y_s3 = jax.random.normal(k5, (20, 128), dtype=jnp.float32) + 2.0
    y_t3 = jax.random.normal(k6, (20, 128), dtype=jnp.float32) * 0.7 - 1.0
    loss3 = jax.block_until_ready(
        distill_kl_logit_stand(y_s3, y_t3, temp, block_rows=8))
    ref3 = _reference(y_s3, y_t3, temp)
    assert jnp.allclose(loss3, ref3, rtol=5e-3, atol=1e-5), (loss3, ref3)

    print("KERNEL_OK")
</pallas_src>

<mosaic_0001>
module attributes {stable_mosaic.version = 11 : i64} {
  func.func @_resident_kernel(%arg0: i32, %arg1: memref<8x128xf32, #tpu.memory_space<vmem>>, %arg2: memref<8x128xf32, #tpu.memory_space<vmem>>, %arg3: memref<1x1xf32, #tpu.memory_space<vmem>>) attributes {dimension_semantics = [#tpu.dimension_semantics<arbitrary>], iteration_bounds = array<i64: 1>, scalar_prefetch = 0 : i64, scratch_operands = 0 : i64, tpu.core_type = #tpu.core_type<tc>, window_params = [{pipeline_mode = #tpu.pipeline_mode<synchronous>, transform_indices = @transform_0, window_bounds = array<i64: 8, 128>}, {pipeline_mode = #tpu.pipeline_mode<synchronous>, transform_indices = @transform_1, window_bounds = array<i64: 8, 128>}, {pipeline_mode = #tpu.pipeline_mode<synchronous>, transform_indices = @transform_2, window_bounds = array<i64: 1, 1>}]} {
    %c0 = arith.constant 0 : index
    %c0_0 = arith.constant 0 : index
    %0 = vector.load %arg1[%c0, %c0_0] : memref<8x128xf32, #tpu.memory_space<vmem>>, vector<8x128xf32>
    %c0_1 = arith.constant 0 : index
    %c0_2 = arith.constant 0 : index
    %1 = vector.load %arg2[%c0_1, %c0_2] : memref<8x128xf32, #tpu.memory_space<vmem>>, vector<8x128xf32>
    %cst = arith.constant dense<0.000000e+00> : vector<8xf32>
    %2 = vector.multi_reduction <add>, %0, %cst [1] : vector<8x128xf32> to vector<8xf32>
    %3 = vector.shape_cast %2 : vector<8xf32> to vector<8x1xf32>
    %cst_3 = arith.constant dense<0.000000e+00> : vector<1xf32>
    %4 = vector.multi_reduction <add>, %3, %cst_3 [0] : vector<8x1xf32> to vector<1xf32>
    %5 = vector.shape_cast %4 : vector<1xf32> to vector<1x1xf32>
    %cst_4 = arith.constant 9.765625E-4 : f32
    %6 = vector.broadcast %cst_4 : f32 to vector<1x1xf32>
    %7 = arith.mulf %5, %6 : vector<1x1xf32>
    %8 = vector.broadcast %7 : vector<1x1xf32> to vector<8x128xf32>
    %9 = arith.subf %0, %8 : vector<8x128xf32>
    %10 = arith.mulf %9, %9 : vector<8x128xf32>
    %cst_5 = arith.constant dense<0.000000e+00> : vector<8xf32>
    %11 = vector.multi_reduction <add>, %10, %cst_5 [1] : vector<8x128xf32> to vector<8xf32>
    %12 = vector.shape_cast %11 : vector<8xf32> to vector<8x1xf32>
    %cst_6 = arith.constant dense<0.000000e+00> : vector<1xf32>
    %13 = vector.multi_reduction <add>, %12, %cst_6 [0] : vector<8x1xf32> to vector<1xf32>
    %14 = vector.shape_cast %13 : vector<1xf32> to vector<1x1xf32>
    %cst_7 = arith.constant 9.77517105E-4 : f32
    %15 = vector.broadcast %cst_7 : f32 to vector<1x1xf32>
    %16 = arith.mulf %14, %15 : vector<1x1xf32>
    %17 = math.sqrt %16 : vector<1x1xf32>
    %cst_8 = arith.constant 1.000000e-07 : f32
    %18 = vector.broadcast %cst_8 : f32 to vector<1x1xf32>
    %19 = arith.addf %18, %17 : vector<1x1xf32>
    %cst_9 = arith.constant 4.000000e+00 : f32
    %20 = vector.broadcast %cst_9 : f32 to vector<1x1xf32>
    %21 = arith.mulf %20, %19 : vector<1x1xf32>
    %cst_10 = arith.constant 1.000000e+00 : f32
    %22 = vector.broadcast %cst_10 : f32 to vector<1x1xf32>
    %23 = arith.divf %22, %21 : vector<1x1xf32>
    %24 = vector.broadcast %23 : vector<1x1xf32> to vector<8x128xf32>
    %25 = arith.mulf %9, %24 : vector<8x128xf32>
    %cst_11 = arith.constant dense<0.000000e+00> : vector<8xf32>
    %26 = vector.multi_reduction <add>, %1, %cst_11 [1] : vector<8x128xf32> to vector<8xf32>
    %27 = vector.shape_cast %26 : vector<8xf32> to vector<8x1xf32>
    %cst_12 = arith.constant dense<0.000000e+00> : vector<1xf32>
    %28 = vector.multi_reduction <add>, %27, %cst_12 [0] : vector<8x1xf32> to vector<1xf32>
    %29 = vector.shape_cast %28 : vector<1xf32> to vector<1x1xf32>
    %cst_13 = arith.constant 9.765625E-4 : f32
    %30 = vector.broadcast %cst_13 : f32 to vector<1x1xf32>
    %31 = arith.mulf %29, %30 : vector<1x1xf32>
    %32 = vector.broadcast %31 : vector<1x1xf32> to vector<8x128xf32>
    %33 = arith.subf %1, %32 : vector<8x128xf32>
    %34 = arith.mulf %33, %33 : vector<8x128xf32>
    %cst_14 = arith.constant dense<0.000000e+00> : vector<8xf32>
    %35 = vector.multi_reduction <add>, %34, %cst_14 [1] : vector<8x128xf32> to vector<8xf32>
    %36 = vector.shape_cast %35 : vector<8xf32> to vector<8x1xf32>
    %cst_15 = arith.constant dense<0.000000e+00> : vector<1xf32>
    %37 = vector.multi_reduction <add>, %36, %cst_15 [0] : vector<8x1xf32> to vector<1xf32>
    %38 = vector.shape_cast %37 : vector<1xf32> to vector<1x1xf32>
    %cst_16 = arith.constant 9.77517105E-4 : f32
    %39 = vector.broadcast %cst_16 : f32 to vector<1x1xf32>
    %40 = arith.mulf %38, %39 : vector<1x1xf32>
    %41 = math.sqrt %40 : vector<1x1xf32>
    %cst_17 = arith.constant 1.000000e-07 : f32
    %42 = vector.broadcast %cst_17 : f32 to vector<1x1xf32>
    %43 = arith.addf %42, %41 : vector<1x1xf32>
    %cst_18 = arith.constant 4.000000e+00 : f32
    %44 = vector.broadcast %cst_18 : f32 to vector<1x1xf32>
    %45 = arith.mulf %44, %43 : vector<1x1xf32>
    %cst_19 = arith.constant 1.000000e+00 : f32
    %46 = vector.broadcast %cst_19 : f32 to vector<1x1xf32>
    %47 = arith.divf %46, %45 : vector<1x1xf32>
    %48 = vector.broadcast %47 : vector<1x1xf32> to vector<8x128xf32>
    %49 = arith.mulf %33, %48 : vector<8x128xf32>
    %cst_20 = arith.constant dense<0xFF800000> : vector<8xf32>
    %50 = vector.multi_reduction <maximumf>, %25, %cst_20 [1] : vector<8x128xf32> to vector<8xf32>
    %51 = vector.shape_cast %50 : vector<8xf32> to vector<8x1xf32>
    %52 = vector.broadcast %51 : vector<8x1xf32> to vector<8x128xf32>
    %53 = arith.subf %25, %52 : vector<8x128xf32>
    %cst_21 = arith.constant dense<0xFF800000> : vector<8xf32>
    %54 = vector.multi_reduction <maximumf>, %49, %cst_21 [1] : vector<8x128xf32> to vector<8xf32>
    %55 = vector.shape_cast %54 : vector<8xf32> to vector<8x1xf32>
    %56 = vector.broadcast %55 : vector<8x1xf32> to vector<8x128xf32>
    %57 = arith.subf %49, %56 : vector<8x128xf32>
    %58 = math.exp %57 : vector<8x128xf32>
    %cst_22 = arith.constant dense<0.000000e+00> : vector<8xf32>
    %59 = vector.multi_reduction <add>, %58, %cst_22 [1] : vector<8x128xf32> to vector<8xf32>
    %60 = vector.shape_cast %59 : vector<8xf32> to vector<8x1xf32>
    %61 = math.exp %53 : vector<8x128xf32>
    %cst_23 = arith.constant dense<0.000000e+00> : vector<8xf32>
    %62 = vector.multi_reduction <add>, %61, %cst_23 [1] : vector<8x128xf32> to vector<8xf32>
    %63 = vector.shape_cast %62 : vector<8xf32> to vector<8x1xf32>
    %64 = arith.subf %57, %53 : vector<8x128xf32>
    %65 = arith.mulf %58, %64 : vector<8x128xf32>
    %cst_24 = arith.constant dense<0.000000e+00> : vector<8xf32>
    %66 = vector.multi_reduction <add>, %65, %cst_24 [1] : vector<8x128xf32> to vector<8xf32>
    %67 = vector.shape_cast %66 : vector<8xf32> to vector<8x1xf32>
    %68 = arith.divf %67, %60 : vector<8x1xf32>
    %69 = arith.divf %63, %60 : vector<8x1xf32>
    %70 = math.log %69 : vector<8x1xf32>
    %71 = arith.addf %68, %70 : vector<8x1xf32>
    %cst_25 = arith.constant dense<0.000000e+00> : vector<1xf32>
    %72 = vector.multi_reduction <add>, %71, %cst_25 [0] : vector<8x1xf32> to vector<1xf32>
    %73 = vector.shape_cast %72 : vector<1xf32> to vector<1x1xf32>
    %cst_26 = arith.constant 2.000000e+00 : f32
    %74 = vector.broadcast %cst_26 : f32 to vector<1x1xf32>
    %75 = arith.mulf %73, %74 : vector<1x1xf32>
    %c0_27 = arith.constant 0 : index
    %c0_28 = arith.constant 0 : index
    %76 = vector.load %arg3[%c0_27, %c0_28] : memref<1x1xf32, #tpu.memory_space<vmem>>, vector<1x1xf32>
    tpu.vector_store %arg3[%c0_27, %c0_28], %75 {strides = array<i32>} : memref<1x1xf32, #tpu.memory_space<vmem>>, vector<1x1xf32>,
    return
  }
  func.func @transform_0(%arg0: i32) -> (i32, i32) {
    %c0_i32 = arith.constant 0 : i32
    %c0_i32_0 = arith.constant 0 : i32
    %c0_i32_1 = arith.constant 0 : i32
    return %c0_i32, %c0_i32_0 : i32, i32
  }
  func.func @transform_1(%arg0: i32) -> (i32, i32) {
    %c0_i32 = arith.constant 0 : i32
    %c0_i32_0 = arith.constant 0 : i32
    %c0_i32_1 = arith.constant 0 : i32
    return %c0_i32, %c0_i32_0 : i32, i32
  }
  func.func @transform_2(%arg0: i32) -> (i32, i32) {
    %c0_i32 = arith.constant 0 : i32
    %c0_i32_0 = arith.constant 0 : i32
    %c0_i32_1 = arith.constant 0 : i32
    return %c0_i32, %c0_i32_0 : i32, i32
  }
}

</mosaic_0001>

<bundles_post_ra>
// kernel: tpu_custom_call.1
= control target key start
LH: loop header
LB: loop body
LE: loop exit
PB: predicated region body
PF: predicated region fallthrough
CT: control target
= control target key end

     0   :  { %7 = vsyncpa [#allocation3], 0  ;;  %s296_s0 = inlined_call_operand.hbm [shape: f32[8,128], index: 0, kind: input, shape index: {}]   ;;  %s297_s1 = inlined_call_operand.hbm [shape: f32[8,128], index: 1, kind: input, shape index: {}]   ;;  %s298_s2 = inlined_call_operand.hbm [shape: f32[1,1], index: 2, kind: output, shape index: {}]  }
   0x1   :  { %8 = vsyncpa [#allocation6], 0 }
   0x2   :  { %9 = vsyncpa [#allocation4], 0  ;;  %s242_s9 = smov [#allocation2]   ;;  %s243_s11 = smov [#allocation5]  }
   0x3   :  { %s16_s10 = sshll.u32 %s242_s9, 4  ;;  %s26_s12 = sshll.u32 %s243_s11, 4  ;;  %s17_s10 = int_to_ptr.vmem [resolvable:$true] %s16_s10  ;;  %s27_s12 = int_to_ptr.vmem [resolvable:$true] %s26_s12 }
   0x4   :  { %s170_s15 = scalar_lea.hbm %s296_s0, 128 }
   0x5   :  { %p171_p0 = scmp.ne.s32.totalorder %s296_s0, %s170_s15  ;;  %p174_p1 = scmp.lt.u32.totalorder %s170_s15, %s296_s0 }
   0x7   :  { %p176_p2 = pnand %p174_p1, %p171_p0 }
   0x9   :  { %179 = shalt.err (!%p176_p2)
}
   0xa   :  { %s180_s20 = scalar_lea.vmem %s17_s10, 128  ;;  %p185_p4 = scmp.lt.s32.totalorder %s17_s10, %s17_s10 }
   0xb   :  { %p181_p3 = scmp.ne.s32.totalorder %s17_s10, %s180_s20  ;;  %p186_p5 = scmp.lt.s32.totalorder %s180_s20, %s180_s20 }
   0xd   :  { %p187_p6 = por %p186_p5, %p185_p4 }
   0xf   :  { %p188_p7 = pnand %p187_p6, %p181_p3 }
  0x11   :  { %191 = shalt.err (!%p188_p7)
}
  0x12   :  { %19 = dma.hbm_to_vmem [thread:$0]  %s296_s0, 128, %s17_s10, [#allocation3]  }
  0x13   :  { %s192_s25 = scalar_lea.hbm %s297_s1, 128 }
  0x14   :  { %p193_p8 = scmp.ne.s32.totalorder %s297_s1, %s192_s25  ;;  %p196_p9 = scmp.lt.u32.totalorder %s192_s25, %s297_s1 }
  0x16   :  { %p198_p10 = pnand %p196_p9, %p193_p8 }
  0x18   :  { %201 = shalt.err (!%p198_p10)
}
  0x19   :  { %s202_s30 = scalar_lea.vmem %s27_s12, 128  ;;  %p207_p12 = scmp.lt.s32.totalorder %s27_s12, %s27_s12 }
  0x1a   :  { %p203_p11 = scmp.ne.s32.totalorder %s27_s12, %s202_s30  ;;  %p208_p13 = scmp.lt.s32.totalorder %s202_s30, %s202_s30 }
  0x1c   :  { %p209_p0 = por %p208_p13, %p207_p12 }
  0x1e   :  { %p210_p1 = pnand %p209_p0, %p203_p11 }
  0x20   :  { %213 = shalt.err (!%p210_p1)
}
  0x21   :  { %29 = dma.hbm_to_vmem [thread:$0]  %s297_s1, 128, %s27_s12, [#allocation6]  }
  0x22   :  { %236 = dma.done.wait [#allocation3], 128  }
  0x23   :  { %237 = vsyncadd [#allocation3], 4294967168 }
  0x24   :  { %238 = dma.done.wait [#allocation6], 128  }
  0x25   :  { %239 = vsyncadd [#allocation6], 4294967168  ;;  %v37_v0 = vld [vmem:[#allocation5] sm:$0xff]  ;;  %v36_v1 = vld [vmem:[#allocation2] sm:$0xff]  ;;  %s244_s1 = smov [#allocation7]   ;;  %vm133_vm4 = vcmask 0  }
  0x26   :  { %70 = vadd.xlane.f32.xlu0 %v37_v0  ;;  %s141_s4 = sshll.u32 %s244_s1, 4  ;;  %s142_s4 = int_to_ptr.vmem [resolvable:$true] %s141_s4 }
  0x27   :  { %s214_s5 = scalar_lea.vmem %s142_s4, 16  ;;  %s218_s6 = scalar_lea.vmem %s142_s4, 32 }
  0x28   :  { %p215_p2 = scmp.ne.s32.totalorder %s142_s4, %s214_s5  ;;  %p219_p3 = scmp.lt.s32.totalorder %s142_s4, %s142_s4 }
  0x29   :  { %p220_p4 = scmp.lt.s32.totalorder %s218_s6, %s214_s5 }
  0x2a   :  { %38 = vadd.xlane.f32.xlu0 %v36_v1 }
  0x2b   :  { %p221_p5 = por %p220_p4, %p219_p3 }
  0x2d   :  { %p222_p6 = pnand %p221_p5, %p215_p2 }
  0xb3   :  { %v71_v2 = vpop.xlane.xlu0 %70 }
  0xb4   :  { %v72_v3 = vrot.slane %v71_v2, 4 }
  0xb6   :  { %v73_v4 = vadd.f32 %v72_v3, %v71_v2 }
  0xb7   :  { %v39_v5 = vpop.xlane.xlu0 %38 }
  0xb8   :  { %v74_v6 = vrot.slane %v73_v4, 2  ;;  %v40_v7 = vrot.slane %v39_v5, 4 }
  0xba   :  { %v75_v8 = vadd.f32 %v74_v6, %v73_v4  ;;  %v41_v9 = vadd.f32 %v40_v7, %v39_v5 }
  0xbc   :  { %v76_v10 = vrot.slane %v75_v8, 1  ;;  %v42_v11 = vrot.slane %v41_v9, 2 }
  0xbe   :  { %v43_v12 = vadd.f32 %v42_v11, %v41_v9  ;;  %v77_v13 = vadd.f32 %v76_v10, %v75_v8 }
  0xc0   :  { %v44_v14 = vrot.slane %v43_v12, 1  ;;  %v78_v15 = vmul.f32 0.0009765625, %v77_v13 }
  0xc2   :  { %v45_v16 = vadd.f32 %v44_v14, %v43_v12  ;;  %v79_v17 = vsub.f32 %v37_v0, %v78_v15 }
  0xc4   :  { %v80_v18 = vmul.f32 %v79_v17, %v79_v17  ;;  %v46_v19 = vmul.f32 0.0009765625, %v45_v16 }
  0xc6   :  { %81 = vadd.xlane.f32.xlu1 %v80_v18  ;;  %v47_v20 = vsub.f32 %v36_v1, %v46_v19 }
  0xc8   :  { %v48_v21 = vmul.f32 %v47_v20, %v47_v20 }
  0xca   :  { %49 = vadd.xlane.f32.xlu1 %v48_v21 }
 0x153   :  { %v82_v22 = vpop.xlane.xlu1 %81 }
 0x154   :  { %v83_v23 = vrot.slane %v82_v22, 4 }
 0x156   :  { %v84_v24 = vadd.f32 %v83_v23, %v82_v22 }
 0x157   :  { %v50_v25 = vpop.xlane.xlu1 %49 }
 0x158   :  { %v85_v26 = vrot.slane %v84_v24, 2  ;;  %v51_v27 = vrot.slane %v50_v25, 4 }
 0x15a   :  { %v86_v28 = vadd.f32 %v85_v26, %v84_v24  ;;  %v52_v29 = vadd.f32 %v51_v27, %v50_v25 }
 0x15c   :  { %v87_v30 = vrot.slane %v86_v28, 1  ;;  %v53_v31 = vrot.slane %v52_v29, 2 }
 0x15e   :  { %v88_v32 = vadd.f32 %v87_v30, %v86_v28  ;;  %v54_v33 = vadd.f32 %v53_v31, %v52_v29 }
 0x160   :  { %v89_v34 = vmul.f32 0.0009775171, %v88_v32  ;;  %v55_v35 = vrot.slane %v54_v33, 1 }
 0x162   :  { %154 = vrsqrt.f32 %v89_v34  ;;  %v56_v36 = vadd.f32 %v55_v35, %v54_v33  ;;  %vm92_vm0 = vcmp.eq.f32.partialorder %v89_v34, inf  ;;  %v95_v40 = vand.u32 2147483648, %v89_v34 }
 0x163   :  { %vm94_vm1 = vcmp.eq.f32.partialorder %v89_v34, 0.0 }
 0x164   :  { %v57_v37 = vmul.f32 0.0009775171, %v56_v36 }
 0x166   :  { %156 = vrsqrt.f32 %v57_v37  ;;  %vm60_vm2 = vcmp.eq.f32.partialorder %v57_v37, inf  ;;  %v63_v46 = vand.u32 2147483648, %v57_v37  ;;  %vm62_vm3 = vcmp.eq.f32.partialorder %v57_v37, 0.0 }
 0x16c   :  { %v155_v38 = vpop.eup %154 }
 0x16d   :  { %v91_v39 = vmul.f32 %v155_v38, %v89_v34 }
 0x16f   :  { %v93_v41 = vsel %vm92_vm0, %v89_v34, %v91_v39 }
 0x170   :  { %v157_v42 = vpop.eup %156  ;;  %v96_v43 = vsel %vm94_vm1, %v95_v40, %v93_v41 }
 0x171   :  { %v97_v44 = vadd.f32 1e-07, %v96_v43  ;;  %v59_v45 = vmul.f32 %v157_v42, %v57_v37 }
 0x173   :  { %v98_v47 = vmul.f32 4.0, %v97_v44  ;;  %v61_v48 = vsel %vm60_vm2, %v57_v37, %v59_v45 }
 0x174   :  { %v64_v49 = vsel %vm62_vm3, %v63_v46, %v61_v48 }
 0x175   :  { %158 = vrcp.f32 %v98_v47  ;;  %v65_v50 = vadd.f32 1e-07, %v64_v49 }
 0x177   :  { %v66_v51 = vmul.f32 4.0, %v65_v50 }
 0x179   :  { %160 = vrcp.f32 %v66_v51 }
 0x17f   :  { %v159_v52 = vpop.eup %158 }
 0x180   :  { %v101_v53 = vmul.f32 %v159_v52, %v79_v17 }
 0x182   :  { %105 = vmax.xlane.f32.xlu0 %v101_v53 }
 0x183   :  { %v161_v54 = vpop.eup %160 }
 0x184   :  { %v69_v55 = vmul.f32 %v161_v54, %v47_v20 }
 0x186   :  { %102 = vmax.xlane.f32.xlu1 %v69_v55 }
 0x20f   :  { %v106_v56 = vpop.xlane.xlu0 %105 }
 0x210   :  { %v107_v57 = vsub.f32 %v101_v53, %v106_v56 }
 0x212   :  { %v108_v58 = vmul.f32 1.442695, %v107_v57 }
 0x213   :  { %v103_v59 = vpop.xlane.xlu1 %102 }
 0x214   :  { %162 = vpow2.f32 %v108_v58  ;;  %v104_v60 = vsub.f32 %v69_v55, %v103_v59 }
 0x216   :  { %v112_v61 = vmul.f32 1.442695, %v104_v60  ;;  %v116_v63 = vsub.f32 %v107_v57, %v104_v60 }
 0x218   :  { %164 = vpow2.f32 %v112_v61 }
 0x21e   :  { %v163_v62 = vpop.eup %162 }
 0x21f   :  { %110 = vadd.xlane.f32.xlu0 %v163_v62  ;;  %v117_v0 = vmul.f32 %v163_v62, %v116_v63 }
 0x222   :  { %v165_v1 = vpop.eup %164 }
 0x223   :  { %114 = vadd.xlane.f32.xlu1 %v165_v1  ;;  %118 = vadd.xlane.f32.xlu0 %v117_v0 }
 0x2ac   :  { %v111_v2 = vpop.xlane.xlu0 %110 }
 0x2ad   :  { %166 = vrcp.f32 %v111_v2 }
 0x2b0   :  { %v115_v4 = vpop.xlane.xlu1 %114  ;;  %v119_v7 = vpop.xlane.xlu0 %118 }
 0x2b7   :  { %v167_v3 = vpop.eup %166 }
 0x2b8   :  { %v122_v5 = vmul.f32 %v167_v3, %v115_v4  ;;  %v121_v9 = vmul.f32 %v167_v3, %v119_v7 }
 0x2ba   :  { %168 = vlog2.f32 %v122_v5 }
 0x2c4   :  { %v169_v6 = vpop.eup %168 }
 0x2c5   :  { %v124_v8 = vmul.f32 0.6931472, %v169_v6 }
 0x2c7   :  { %v125_v10 = vadd.f32 %v124_v8, %v121_v9 }
 0x2c9   :  { %v126_v11 = vrot.slane %v125_v10, 4 }
 0x2cb   :  { %v127_v12 = vadd.f32 %v126_v11, %v125_v10 }
 0x2cd   :  { %v128_v13 = vrot.slane %v127_v12, 2 }
 0x2cf   :  { %v129_v14 = vadd.f32 %v128_v13, %v127_v12 }
 0x2d1   :  { %v130_v15 = vrot.slane %v129_v14, 1 }
 0x2d3   :  { %v131_v16 = vadd.f32 %v130_v15, %v129_v14 }
 0x2d5   :  { %v132_v17 = vmul.f32 2.0, %v131_v16 }
 0x2d7   :  { %134 = vst.msk [vmem:[#allocation7] sm:$0x1] %vm133_vm4, %v132_v17 }
 0x2d8   :  { %225 = shalt.err (!%p222_p6)
}
 0x2d9   :  { %s226_s9 = scalar_lea.hbm %s298_s2, 16 }
 0x2da   :  { %p227_p7 = scmp.ne.s32.totalorder %s298_s2, %s226_s9  ;;  %p230_p8 = scmp.lt.u32.totalorder %s226_s9, %s298_s2 }
 0x2dc   :  { %p232_p9 = pnand %p230_p8, %p227_p7 }
 0x2de   :  { %235 = shalt.err (!%p232_p9)
}
 0x2df   :  { %144 = dma.vmem_to_hbm [thread:$0]  %s142_s4, 16, %s298_s2, [#allocation4]  }
 0x2e0   :  { %240 = dma.done.wait [#allocation4], 16  }
 0x2e1   :  { %241 = vsyncadd [#allocation4], 4294967280 }
 0x2e2   :  { %148 = vsyncpa [#allocation3], 1 }
 0x2e3   :  { %149 = vsyncpa [#allocation6], 1 }
 0x2e4   :  { %150 = vsyncpa [#allocation4], 1 }

</bundles_post_ra>
